<compile_context>
chip_gen: v7x
topology: tpu7x:2x2x1
jax: 0.10.0
libtpu: 0.0.40
codegen_flags: <defaults>
</compile_context>

<pallas_src>
import jax
import jax.numpy as jnp
from jax.experimental import pallas as pl
from jax.experimental.pallas import tpu as pltpu

_EPS = 1e-12            # torch.nn.functional.normalize default eps
_EPS_SQ = _EPS * _EPS   # compare against the squared norm (monotone, exact equivalence)


def _exemplar_matching_kernel(img_ref, ex_ref, out_ref):
    # img_ref: (bt, tn, D)   ex_ref: (bt, M, D)   out_ref: (bt, tn, M)
    img = img_ref[...].astype(jnp.float32)
    ex = ex_ref[...].astype(jnp.float32)

    # 1 / max(||x||, eps) == rsqrt(max(||x||^2, eps^2))  -> EUP rsqrt, not VALU divide.
    inv_img = jax.lax.rsqrt(
        jnp.maximum(jnp.sum(img * img, axis=-1, keepdims=True), _EPS_SQ))   # (bt, tn, 1)
    inv_ex = jax.lax.rsqrt(
        jnp.maximum(jnp.sum(ex * ex, axis=-1, keepdims=True), _EPS_SQ))     # (bt, M, 1)

    # Pre-scale BOTH operands on the lane-dense D side (matches torch's
    # normalize-then-matmul and removes the lane-sparse (bt, tn, M) epilogue
    # multiplies entirely). Cast back to the native dtype so the MXU runs at
    # full rate for bf16 inputs; accumulate in f32.
    img_n = (img * inv_img).astype(img_ref.dtype)
    ex_n = (ex * inv_ex).astype(ex_ref.dtype)

    sim = jnp.einsum("bnd,bmd->bnm", img_n, ex_n,
                     preferred_element_type=jnp.float32)                     # (bt, tn, M)
    out_ref[...] = sim.astype(out_ref.dtype)


def _pad_to(x, m):
    return ((x + m - 1) // m) * m


def _sublane(dtype):
    # Sublane packing multiple: 8 for 4-byte, 16 for 2-byte, 32 for 1-byte dtypes.
    return max(8, 32 // jnp.dtype(dtype).itemsize)


def _vmem_capacity_bytes():
    try:
        return int(pltpu.get_tpu_info().vmem_capacity_bytes)
    except Exception:
        return 64 * 1024 * 1024   # conservative fallback (v7x per-TC VMEM)


def _choose_tiles(B, N, D, M, in_dtype, out_dtype, budget_bytes):
    """Pick (batch_tile, n_tile) with layout-correct VMEM accounting and a multi-step grid."""
    in_item = jnp.dtype(in_dtype).itemsize
    out_item = jnp.dtype(out_dtype).itemsize
    sub_in = _sublane(in_dtype)
    sub_out = _sublane(out_dtype)

    def block_bytes(bt, tn):
        # Real VMEM footprint of one grid step: last dim pads to 128 lanes,
        # second-to-last pads to the sublane multiple; every pipelined block is
        # double-buffered by the Pallas pipeline.
        img_blk = bt * _pad_to(tn, sub_in) * _pad_to(D, 128) * in_item
        ex_blk = bt * _pad_to(M, sub_in) * _pad_to(D, 128) * in_item
        out_blk = bt * _pad_to(tn, sub_out) * _pad_to(M, 128) * out_item
        pipelined = 2 * (img_blk + ex_blk + out_blk)
        # In-kernel f32 temporaries: normalized img/ex copies + f32 sim.
        f32_tmp = 4 * bt * (_pad_to(tn, 8) * _pad_to(D, 128)
                            + _pad_to(M, 8) * _pad_to(D, 128)
                            + _pad_to(tn, 8) * _pad_to(M, 128))
        return pipelined + f32_tmp

    def shrink_tn(tn):
        half = tn // 2
        if half >= 128:
            return (half // 128) * 128   # MXU-friendly 128-row alignment
        if half >= 8:
            return (half // 8) * 8       # sublane alignment; ragged last block is masked
        return tn

    def n_steps(bt, tn):
        return -(-B // bt) * -(-N // tn)

    bt, tn = B, N
    # 1) Fit the (padding-corrected, double-buffered) blocks into the budget.
    while bt > 1 and block_bytes(bt, tn) > budget_bytes:
        bt = (bt + 1) // 2
    while block_bytes(bt, tn) > budget_bytes:
        new_tn = shrink_tn(tn)
        if new_tn == tn:
            break
        tn = new_tn
    # 2) Guarantee a multi-step grid (target >= 4 steps) so DMA overlaps compute and
    #    both v7x TensorCores get work. Prefer splitting batch, then N.
    target_steps = 4
    while n_steps(bt, tn) < target_steps and bt > 1:
        bt = (bt + 1) // 2
    while n_steps(bt, tn) < target_steps:
        new_tn = shrink_tn(tn)
        if new_tn == tn or new_tn < 128:   # keep at least one 128-row MXU tile
            break
        tn = new_tn
    return bt, tn


def exemplar_image_matching(image_features, exemplar_features):
    """JAX/Pallas equivalent of ExemplarImageMatching.forward."""
    if image_features.shape[-1] != exemplar_features.shape[-1]:
        raise ValueError(
            f"Embedding dimensions must match: image_features={image_features.shape[-1]}, "
            f"exemplar_features={exemplar_features.shape[-1]}"
        )
    B, N, D = image_features.shape
    _, M, _ = exemplar_features.shape

    s = int(round(N ** 0.5))
    if s * s != N:
        raise ValueError(f"image_features token count N={N} must be a perfect square")

    out_dtype = image_features.dtype
    vmem_cap = _vmem_capacity_bytes()
    budget_bytes = vmem_cap // 4                              # block budget with headroom
    vmem_limit = int(min(vmem_cap // 2, 128 * 1024 * 1024))   # scoped VMEM limit

    bt, tn = _choose_tiles(B, N, D, M, image_features.dtype, out_dtype, budget_bytes)
    grid = (pl.cdiv(B, bt), pl.cdiv(N, tn))

    sim = pl.pallas_call(
        _exemplar_matching_kernel,
        out_shape=jax.ShapeDtypeStruct((B, N, M), out_dtype),
        grid_spec=pltpu.PrefetchScalarGridSpec(
            num_scalar_prefetch=0,
            grid=grid,
            in_specs=[
                pl.BlockSpec((bt, tn, D), lambda b, n: (b, n, 0)),
                # Exemplars stay resident across the N axis (index ignores n -> no re-DMA).
                pl.BlockSpec((bt, M, D), lambda b, n: (b, 0, 0)),
            ],
            out_specs=pl.BlockSpec((bt, tn, M), lambda b, n: (b, n, 0)),
        ),
        compiler_params=pltpu.CompilerParams(
            dimension_semantics=("parallel", "parallel"),
            vmem_limit_bytes=vmem_limit,
        ),
    )(image_features, exemplar_features)

    # Exact reproduction of torch's `.view(B, M, s, s)` on the contiguous (B, N, M)
    # buffer: a raw (zero-copy) reshape, NOT a permute.
    return jnp.reshape(sim, (B, M, s, s))


def _reference(image_features, exemplar_features):
    B, N, _ = image_features.shape
    M = exemplar_features.shape[1]
    s = int(round(N ** 0.5))
    img_n = image_features / jnp.maximum(
        jnp.linalg.norm(image_features, axis=-1, keepdims=True), _EPS)
    ex_n = exemplar_features / jnp.maximum(
        jnp.linalg.norm(exemplar_features, axis=-1, keepdims=True), _EPS)
    sim = jnp.einsum("bnd,bmd->bnm", img_n, ex_n)
    return jnp.reshape(sim, (B, M, s, s))


if __name__ == "__main__":
    key = jax.random.PRNGKey(0)
    k1, k2 = jax.random.split(key)

    B, N, D, M = 2, 256, 32, 8   # N = 16*16 -> 16x16 spatial similarity maps
    image_features = jax.random.normal(k1, (B, N, D), dtype=jnp.float32)
    exemplar_features = jax.random.normal(k2, (B, M, D), dtype=jnp.float32)

    out = exemplar_image_matching(image_features, exemplar_features)
    out = jax.block_until_ready(out)

    ref = _reference(image_features, exemplar_features)
    assert out.shape == (B, M, 16, 16), out.shape
    assert jnp.allclose(out, ref, atol=2e-5, rtol=2e-5), "mismatch vs reference"

    print("KERNEL_OK")
</pallas_src>

<mosaic_0001>
module attributes {stable_mosaic.version = 11 : i64} {
  func.func @_exemplar_matching_kernel(%arg0: i32, %arg1: i32, %arg2: memref<1x128x32xf32, #tpu.memory_space<vmem>>, %arg3: memref<1x8x32xf32, #tpu.memory_space<vmem>>, %arg4: memref<1x128x8xf32, #tpu.memory_space<vmem>>) attributes {dimension_semantics = [#tpu.dimension_semantics<parallel>, #tpu.dimension_semantics<parallel>], iteration_bounds = array<i64: 2, 2>, scalar_prefetch = 0 : i64, scratch_operands = 0 : i64, tpu.core_type = #tpu.core_type<tc>, window_params = [{transform_indices = @transform_0, window_bounds = array<i64: 1, 128, 32>}, {transform_indices = @transform_1, window_bounds = array<i64: 1, 8, 32>}, {transform_indices = @transform_2, window_bounds = array<i64: 1, 128, 8>}]} {
    %c0 = arith.constant 0 : index
    %c0_0 = arith.constant 0 : index
    %c0_1 = arith.constant 0 : index
    %0 = vector.load %arg2[%c0, %c0_0, %c0_1] : memref<1x128x32xf32, #tpu.memory_space<vmem>>, vector<1x128x32xf32>
    %c0_2 = arith.constant 0 : index
    %c0_3 = arith.constant 0 : index
    %c0_4 = arith.constant 0 : index
    %1 = vector.load %arg3[%c0_2, %c0_3, %c0_4] : memref<1x8x32xf32, #tpu.memory_space<vmem>>, vector<1x8x32xf32>
    %2 = arith.mulf %0, %0 : vector<1x128x32xf32>
    %cst = arith.constant dense<0.000000e+00> : vector<1x128xf32>
    %3 = vector.multi_reduction <add>, %2, %cst [2] : vector<1x128x32xf32> to vector<1x128xf32>
    %4 = vector.shape_cast %3 : vector<1x128xf32> to vector<1x128x1xf32>
    %cst_5 = arith.constant 1.000000e-24 : f32
    %5 = vector.broadcast %cst_5 : f32 to vector<1x128x1xf32>
    %6 = arith.maximumf %4, %5 : vector<1x128x1xf32>
    %7 = math.rsqrt %6 : vector<1x128x1xf32>
    %8 = arith.mulf %1, %1 : vector<1x8x32xf32>
    %cst_6 = arith.constant dense<0.000000e+00> : vector<1x8xf32>
    %9 = vector.multi_reduction <add>, %8, %cst_6 [2] : vector<1x8x32xf32> to vector<1x8xf32>
    %10 = vector.shape_cast %9 : vector<1x8xf32> to vector<1x8x1xf32>
    %cst_7 = arith.constant 1.000000e-24 : f32
    %11 = vector.broadcast %cst_7 : f32 to vector<1x8x1xf32>
    %12 = arith.maximumf %10, %11 : vector<1x8x1xf32>
    %13 = math.rsqrt %12 : vector<1x8x1xf32>
    %14 = vector.broadcast %7 : vector<1x128x1xf32> to vector<1x128x32xf32>
    %15 = arith.mulf %0, %14 : vector<1x128x32xf32>
    %16 = vector.broadcast %13 : vector<1x8x1xf32> to vector<1x8x32xf32>
    %17 = arith.mulf %1, %16 : vector<1x8x32xf32>
    "tpu.trace_start"() <{level = 10 : i32, message = "bnd,bmd->bnm"}> : () -> ()
    %cst_8 = arith.constant dense<0.000000e+00> : vector<1x128x8xf32>
    %18 = tpu.matmul %15, %17, %cst_8 {dimension_numbers = #tpu.dot_dimension_numbers<[2], [2], [1], [1], [0, 0, 0, 1, 1, 1], [0], [0]>} : vector<1x128x32xf32>, vector<1x8x32xf32>, vector<1x128x8xf32> -> vector<1x128x8xf32>
    "tpu.trace_stop"() : () -> ()
    %c0_9 = arith.constant 0 : index
    %c0_10 = arith.constant 0 : index
    %c0_11 = arith.constant 0 : index
    %19 = vector.load %arg4[%c0_9, %c0_10, %c0_11] : memref<1x128x8xf32, #tpu.memory_space<vmem>>, vector<1x128x8xf32>
    tpu.vector_store %arg4[%c0_9, %c0_10, %c0_11], %18 {strides = array<i32>} : memref<1x128x8xf32, #tpu.memory_space<vmem>>, vector<1x128x8xf32>,
    return
  }
  func.func @transform_0(%arg0: i32, %arg1: i32) -> (i32, i32, i32) {
    %c0_i32 = arith.constant 0 : i32
    %c0_i32_0 = arith.constant 0 : i32
    return %arg0, %arg1, %c0_i32 : i32, i32, i32
  }
  func.func @transform_1(%arg0: i32, %arg1: i32) -> (i32, i32, i32) {
    %c0_i32 = arith.constant 0 : i32
    %c0_i32_0 = arith.constant 0 : i32
    %c0_i32_1 = arith.constant 0 : i32
    return %arg0, %c0_i32, %c0_i32_0 : i32, i32, i32
  }
  func.func @transform_2(%arg0: i32, %arg1: i32) -> (i32, i32, i32) {
    %c0_i32 = arith.constant 0 : i32
    %c0_i32_0 = arith.constant 0 : i32
    return %arg0, %arg1, %c0_i32 : i32, i32, i32
  }
}

</mosaic_0001>

<bundles_post_ra>
// kernel: tpu_custom_call.1
= control target key start
LH: loop header
LB: loop body
LE: loop exit
PB: predicated region body
PF: predicated region fallthrough
CT: control target
= control target key end

     0   :  { %s857_s9 = smov 0   ;;  %s859_s10 = smov 0   ;;  %s1092_s0 = inlined_call_operand.vmem [shape: f32[2,256,32], index: 0, kind: input, shape index: {}]   ;;  %s1093_s1 = inlined_call_operand.vmem [shape: f32[2,8,32], index: 1, kind: input, shape index: {}]   ;;  %s1094_s2 = inlined_call_operand.vmem [shape: f32[2,256,8], index: 2, kind: output, shape index: {}]  }
   0x1   :  { %s861_s11 = smov 0   ;;  %s863_s12 = smov 0  }
   0x2   :  { %s865_s13 = smov 0  }
   0x3 LB: > { %s21_s14 = sadd.s32 1, %s832_s11  ;;  %s24_s15 = sadd.s32 1, %s836_s12  ;;  %s840_s13 = sphi %s865_s13, %s12_s13   ;;  %s836_s12 = sphi %s863_s12, %s1098_s12   ;;  %s832_s11 = sphi %s861_s11, %s1097_s11   ;;  %s828_s10 = sphi %s859_s10, %s1096_s10   ;;  %s824_s9 = sphi %s857_s9, %s1095_s9  }
   0x4   : > { %p22_p0 = scmp.ge.s32.totalorder %s21_s14, 2  ;;  %p656_p1 = scmp.ge.s32.totalorder %s840_s13, 1 }
   0x5   : > { %p142_p2 = scmp.lt.s32.totalorder %s840_s13, 5 }
   0x6   : > { %s1100_s14 = smov (%p22_p0, %s21_s14), 0  ;;  %s1102_s15 = smov (!%p22_p0, %s24_s15), %s836_s12 }
   0x7   : > { %p143_p3 = pnand %p656_p1, %p142_p2  ;;  %p26_p4 = scmp.ge.s32.totalorder %s1102_s15, 2 }
   0x8   : > { %p177_p5 = scmp.lt.s32.totalorder (!%p143_p3), %s828_s10, 1  ;;  %s657_s16 = sshll.u32 (!%p143_p3), %s824_s9, 4  ;;  %vm233_vm0 = vcmask (!%p143_p3), 261120   ;;  %vm533_vm1 = vcmask (!%p143_p3), 64512  }
   0x9   : > { %s1104_s15 = smov (%p26_p4, %s1102_s15), 0  ;;  %146 = sbr.rel (%p143_p3) target bundleno = 426 (0x1aa), region = 28 }
   0xa   : > { %p179_p6 = scmp.lt.s32.totalorder (!%p143_p3), %s657_s16, 31 }
  0x10   : > { %s1106_s10 = smov (!%p177_p5, %s828_s10), 1  ;;  %s1108_s16 = smov (!%p179_p6, %s657_s16), 31 }
  0x11   : > { %s660_s17 = sshll.u32 %s1106_s10, 3  ;;  %s658_s18 = sshll.u32 %s1106_s10, 5 }
  0x12   : > { %s189_s21 = scalar_lea.vmem %s1093_s1, %s660_s17  ;;  %s890_s22 = sadd.s32 %s658_s18, %s1108_s16 }
  0x13   : > { %v892_v0 = vld [vmem:[%s189_s21] sm:$0xff]  ;;  %s659_s23 = sshll.u32 %s890_s22, 3 }
  0x14   : > { %v314_v1 = vmul.f32 %v892_v0, %v892_v0  ;;  %s902_s26 = scalar_lea.vmem %s1092_s0, %s659_s23  ;;  %s1043_s29 = scalar_lea.vmem %s1094_s2, %s659_s23 }
  0x15   : > { %v905_v2 = vld [vmem:[%s902_s26 + $0x40] sm:$0xff]  ;;  %v911_v4 = vld [vmem:[%s902_s26 + $0x8] sm:$0xff]  ;;  %v924_v10 = vld [vmem:[%s902_s26 + $0x10] sm:$0xff] }
  0x16   : > { %v908_v3 = vld [vmem:[%s902_s26] sm:$0xff]  ;;  %v315_v5 = vsel %vm233_vm0, %v314_v1, 0.0  ;;  %v225_v6 = vmul.f32 %v905_v2, %v905_v2  ;;  %v218_v8 = vmul.f32 %v911_v4, %v911_v4  ;;  %v921_v9 = vld [vmem:[%s902_s26 + $0x48] sm:$0xff]  ;;  %v931_v14 = vld [vmem:[%s902_s26 + $0x50] sm:$0xff]  ;;  %v219_v16 = vmul.f32 %v924_v10, %v924_v10 }
  0x17   : > { %v217_v7 = vmul.f32 %v908_v3, %v908_v3  ;;  %316 = vadd.xlane.f32.xlu0 %v315_v5  ;;  %v226_v13 = vmul.f32 %v921_v9, %v921_v9  ;;  %v937_v17 = vld [vmem:[%s902_s26 + $0x18] sm:$0xff]  ;;  %v227_v19 = vmul.f32 %v931_v14, %v931_v14  ;;  %v949_v23 = vld [vmem:[%s902_s26 + $0x20] sm:$0xff]  ;;  %v961_v29 = vld [vmem:[%s902_s26 + $0x28] sm:$0xff] }
  0x18   : > { %v258_v11 = vsel %vm233_vm0, %v225_v6, 0.0  ;;  %v237_v15 = vsel %vm233_vm0, %v218_v8, 0.0  ;;  %v943_v20 = vld [vmem:[%s902_s26 + $0x58] sm:$0xff]  ;;  %v240_v21 = vsel %vm233_vm0, %v219_v16, 0.0  ;;  %v220_v22 = vmul.f32 %v937_v17, %v937_v17  ;;  %v955_v26 = vld [vmem:[%s902_s26 + $0x60] sm:$0xff]  ;;  %v967_v32 = vld [vmem:[%s902_s26 + $0x68] sm:$0xff] }
  0x19   : > { %v234_v12 = vsel %vm233_vm0, %v217_v7, 0.0  ;;  %259 = vadd.xlane.f32.xlu1 %v258_v11  ;;  %v261_v18 = vsel %vm233_vm0, %v226_v13, 0.0  ;;  %v264_v24 = vsel %vm233_vm0, %v227_v19, 0.0  ;;  %v228_v25 = vmul.f32 %v943_v20, %v943_v20  ;;  %v973_v35 = vld [vmem:[%s902_s26 + $0x30] sm:$0xff]  ;;  %v985_v41 = vld [vmem:[%s902_s26 + $0x38] sm:$0xff] }
  0x1a   : > { %v243_v27 = vsel %vm233_vm0, %v220_v22, 0.0  ;;  %v221_v28 = vmul.f32 %v949_v23, %v949_v23  ;;  %v229_v31 = vmul.f32 %v955_v26, %v955_v26  ;;  %v222_v34 = vmul.f32 %v961_v29, %v961_v29  ;;  %v979_v38 = vld [vmem:[%s902_s26 + $0x70] sm:$0xff]  ;;  %v991_v44 = vld [vmem:[%s902_s26 + $0x78] sm:$0xff] }
  0x1b   : > { %235 = vadd.xlane.f32.xlu0 %v234_v12  ;;  %v267_v30 = vsel %vm233_vm0, %v228_v25, 0.0  ;;  %v230_v37 = vmul.f32 %v967_v32, %v967_v32  ;;  %v223_v40 = vmul.f32 %v973_v35, %v973_v35  ;;  %v231_v43 = vmul.f32 %v979_v38, %v979_v38 }
  0x1c   : > { %v246_v33 = vsel %vm233_vm0, %v221_v28, 0.0  ;;  %v270_v36 = vsel %vm233_vm0, %v229_v31, 0.0  ;;  %v249_v39 = vsel %vm233_vm0, %v222_v34, 0.0  ;;  %v224_v46 = vmul.f32 %v985_v41, %v985_v41 }
  0x1d   : > { %238 = vadd.xlane.f32.xlu1 %v237_v15  ;;  %v273_v42 = vsel %vm233_vm0, %v230_v37, 0.0  ;;  %v252_v45 = vsel %vm233_vm0, %v223_v40, 0.0  ;;  %v276_v47 = vsel %vm233_vm0, %v231_v43, 0.0  ;;  %v232_v48 = vmul.f32 %v991_v44, %v991_v44 }
  0x1e   : > { %v255_v49 = vsel %vm233_vm0, %v224_v46, 0.0 }
  0x1f   : > { %262 = vadd.xlane.f32.xlu0 %v261_v18  ;;  %v279_v50 = vsel %vm233_vm0, %v232_v48, 0.0 }
  0x21   : > { %241 = vadd.xlane.f32.xlu1 %v240_v21 }
  0x23   : > { %265 = vadd.xlane.f32.xlu0 %v264_v24 }
  0x25   : > { %244 = vadd.xlane.f32.xlu1 %v243_v27 }
  0x27   : > { %268 = vadd.xlane.f32.xlu0 %v267_v30 }
  0x29   : > { %247 = vadd.xlane.f32.xlu1 %v246_v33 }
  0x2b   : > { %271 = vadd.xlane.f32.xlu0 %v270_v36 }
  0x2d   : > { %250 = vadd.xlane.f32.xlu1 %v249_v39 }
  0x2f   : > { %274 = vadd.xlane.f32.xlu0 %v273_v42 }
  0x31   : > { %253 = vadd.xlane.f32.xlu1 %v252_v45 }
  0x33   : > { %277 = vadd.xlane.f32.xlu0 %v276_v47 }
  0x35   : > { %256 = vadd.xlane.f32.xlu1 %v255_v49 }
  0x37   : > { %280 = vadd.xlane.f32.xlu0 %v279_v50 }
  0xa4   : > { %v317_v51 = vpop.xlane.xlu0 %316 }
  0xa5   : > { %v318_v52 = vmax.f32 %v317_v51, 1e-24 }
  0xa6   : > { %v260_v53 = vpop.xlane.xlu1 %259 }
  0xa7   : > { %768 = vrsqrt.f32 %v318_v52  ;;  %v290_v54 = vmax.f32 %v260_v53, 1e-24 }
  0xa8   : > { %v236_v55 = vpop.xlane.xlu0 %235 }
  0xa9   : > { %770 = vrsqrt.f32 %v290_v54  ;;  %v282_v56 = vmax.f32 %v236_v55, 1e-24 }
  0xaa   : > { %v239_v57 = vpop.xlane.xlu1 %238 }
  0xab   : > { %772 = vrsqrt.f32 %v282_v56  ;;  %v283_v58 = vmax.f32 %v239_v57, 1e-24 }
  0xac   : > { %v263_v59 = vpop.xlane.xlu0 %262 }
  0xad   : > { %774 = vrsqrt.f32 %v283_v58  ;;  %v291_v60 = vmax.f32 %v263_v59, 1e-24 }
  0xae   : > { %v242_v61 = vpop.xlane.xlu1 %241 }
  0xaf   : > { %776 = vrsqrt.f32 %v291_v60  ;;  %v284_v62 = vmax.f32 %v242_v61, 1e-24 }
  0xb0   : > { %v266_v63 = vpop.xlane.xlu0 %265 }
  0xb1   : > { %v769_v1 = vpop.eup %768  ;;  %778 = vrsqrt.f32 %v284_v62  ;;  %v292_v5 = vmax.f32 %v266_v63, 1e-24 }
  0xb2   : > { %v245_v6 = vpop.xlane.xlu1 %244  ;;  %v336_v7 = vmul.f32 %v769_v1, %v892_v0 }
  0xb3   : > { %v771_v8 = vpop.eup %770  ;;  %780 = vrsqrt.f32 %v292_v5  ;;  %v285_v11 = vmax.f32 %v245_v6, 1e-24 }
  0xb4   : > { %700 = vmatprep.subr.msk.mxu0 %vm233_vm0, %v336_v7  ;;  %726 = vmatprep.subr.msk.mxu1 %vm233_vm0, %v336_v7  ;;  %v269_v12 = vpop.xlane.xlu0 %268  ;;  %v328_v13 = vmul.f32 %v771_v8, %v905_v2 }
  0xb5   : > { %v773_v15 = vpop.eup %772  ;;  %782 = vrsqrt.f32 %v285_v11  ;;  %v293_v16 = vmax.f32 %v269_v12, 1e-24  ;;  %701 = vmatpush3.xpose.msk.msra.mxu0 %vm233_vm0, %v336_v7  ;;  %727 = vmatpush3.xpose.msk.msra.mxu1 %vm233_vm0, %v336_v7 }
  0xb6   : > { %v248_v18 = vpop.xlane.xlu1 %247  ;;  %v320_v0 = vmul.f32 %v773_v15, %v908_v3  ;;  %714 = vmatprep.mubr.msk.f32.mxu1 %vm233_vm0, %v328_v13 }
  0xb7   : > { %v775_v19 = vpop.eup %774  ;;  %784 = vrsqrt.f32 %v293_v16  ;;  %v286_v21 = vmax.f32 %v248_v18, 1e-24 }
  0xb8   : > { %702 = vmatprep.mubr.msk.f32.mxu0 %vm233_vm0, %v320_v0  ;;  %v272_v22 = vpop.xlane.xlu0 %271  ;;  %v321_v2 = vmul.f32 %v775_v19, %v911_v4 }
  0xb9   : > { %v777_v24 = vpop.eup %776  ;;  %786 = vrsqrt.f32 %v286_v21  ;;  %v294_v25 = vmax.f32 %v272_v22, 1e-24 }
  0xba   : > { %v251_v27 = vpop.xlane.xlu1 %250  ;;  %703 = vmatmul.mubr.msk.f32.vlgmr.msra.gmra.mrb[0].mxu0 %vm233_vm0, %v321_v2  ;;  %v329_v28 = vmul.f32 %v777_v24, %v921_v9 }
  0xbb   : > { %v779_v30 = vpop.eup %778  ;;  %788 = vrsqrt.f32 %v294_v25  ;;  %v287_v3 = vmax.f32 %v251_v27, 1e-24 }
  0xbc   : > { %715 = vmatmul.mubr.msk.f32.vlgmr.msra.gmra.mrb[0].mxu1 %vm233_vm0, %v329_v28  ;;  %v275_v31 = vpop.xlane.xlu0 %274  ;;  %v322_v33 = vmul.f32 %v779_v30, %v924_v10 }
  0xbd   : > { %v781_v34 = vpop.eup %780  ;;  %790 = vrsqrt.f32 %v287_v3  ;;  %v295_v36 = vmax.f32 %v275_v31, 1e-24 }
  0xbe   : > { %v254_v4 = vpop.xlane.xlu1 %253  ;;  %705 = vmatprep.mubr.msk.f32.mxu0 %vm233_vm0, %v322_v33  ;;  %v330_v37 = vmul.f32 %v781_v34, %v931_v14 }
  0xbf   : > { %v783_v39 = vpop.eup %782  ;;  %792 = vrsqrt.f32 %v295_v36  ;;  %v288_v40 = vmax.f32 %v254_v4, 1e-24 }
  0xc0   : > { %717 = vmatprep.mubr.msk.f32.mxu1 %vm233_vm0, %v330_v37  ;;  %v278_v9 = vpop.xlane.xlu0 %277  ;;  %v323_v42 = vmul.f32 %v783_v39, %v937_v17 }
  0xc1   : > { %v785_v43 = vpop.eup %784  ;;  %794 = vrsqrt.f32 %v288_v40  ;;  %v296_v45 = vmax.f32 %v278_v9, 1e-24 }
  0xc2   : > { %v257_v10 = vpop.xlane.xlu1 %256  ;;  %706 = vmatmul.mubr.msk.f32.gmra.mrb[2].mxu0 %vm233_vm0, %v323_v42  ;;  %v331_v46 = vmul.f32 %v785_v43, %v943_v20 }
  0xc3   : > { %v787_v47 = vpop.eup %786  ;;  %796 = vrsqrt.f32 %v296_v45  ;;  %v289_v48 = vmax.f32 %v257_v10, 1e-24 }
  0xc4   : > { %718 = vmatmul.mubr.msk.f32.gmra.mrb[2].mxu1 %vm233_vm0, %v331_v46  ;;  %v281_v14 = vpop.xlane.xlu0 %280  ;;  %v324_v49 = vmul.f32 %v787_v47, %v949_v23 }
  0xc5   : > { %v789_v50 = vpop.eup %788  ;;  %798 = vrsqrt.f32 %v289_v48  ;;  %v297_v51 = vmax.f32 %v281_v14, 1e-24 }
  0xc6   : > { %708 = vmatprep.mubr.msk.f32.mxu0 %vm233_vm0, %v324_v49  ;;  %v332_v17 = vmul.f32 %v789_v50, %v955_v26 }
  0xc7   : > { %v791_v52 = vpop.eup %790  ;;  %800 = vrsqrt.f32 %v297_v51 }
  0xc8   : > { %720 = vmatprep.mubr.msk.f32.mxu1 %vm233_vm0, %v332_v17  ;;  %v325_v20 = vmul.f32 %v791_v52, %v961_v29 }
  0xc9   : > { %v793_v53 = vpop.eup %792 }
  0xca   : > { %709 = vmatmul.mubr.msk.f32.gmra.mrb[4].mxu0 %vm233_vm0, %v325_v20  ;;  %v333_v54 = vmul.f32 %v793_v53, %v967_v32 }
  0xcb   : > { %v795_v23 = vpop.eup %794 }
  0xcc   : > { %721 = vmatmul.mubr.msk.f32.gmra.mrb[4].mxu1 %vm233_vm0, %v333_v54  ;;  %v326_v55 = vmul.f32 %v795_v23, %v973_v35 }
  0xcd   : > { %v797_v56 = vpop.eup %796 }
  0xce   : > { %711 = vmatprep.mubr.msk.f32.mxu0 %vm233_vm0, %v326_v55  ;;  %v334_v26 = vmul.f32 %v797_v56, %v979_v38 }
  0xcf   : > { %v799_v57 = vpop.eup %798 }
  0xd0   : > { %723 = vmatprep.mubr.msk.f32.mxu1 %vm233_vm0, %v334_v26  ;;  %v327_v29 = vmul.f32 %v799_v57, %v985_v41 }
  0xd1   : > { %v801_v58 = vpop.eup %800 }
  0xd2   : > { %712 = vmatmul.mubr.msk.f32.gmra.mrb[6].mxu0 %vm233_vm0, %v327_v29  ;;  %v335_v32 = vmul.f32 %v801_v58, %v991_v44 }
  0xd4   : > { %724 = vmatmul.mubr.msk.f32.gmra.mrb[6].mxu1 %vm233_vm0, %v335_v32 }
 0x18d   : > { %v704_v35 = vpop.f32.mrb[0].mxu0 }
 0x18e   : > { %535 = vst.msk [vmem:[%s1043_s29 + $0x8] sm:$0xff] %vm533_vm1, %v704_v35  ;;  %v454_v38 = vpop.f32.mrb[1].mxu0 }
 0x18f   : > { %534 = vst.msk [vmem:[%s1043_s29] sm:$0xff] %vm533_vm1, %v454_v38  ;;  %v716_v41 = vpop.f32.mrb[0].mxu1 }
 0x190   : > { %543 = vst.msk [vmem:[%s1043_s29 + $0x48] sm:$0xff] %vm533_vm1, %v716_v41  ;;  %v494_v44 = vpop.f32.mrb[1].mxu1 }
 0x191   : > { %542 = vst.msk [vmem:[%s1043_s29 + $0x40] sm:$0xff] %vm533_vm1, %v494_v44 }
 0x195   : > { %v707_v59 = vpop.f32.mrb[2].mxu0 }
 0x196   : > { %537 = vst.msk [vmem:[%s1043_s29 + $0x18] sm:$0xff] %vm533_vm1, %v707_v59  ;;  %v464_v60 = vpop.f32.mrb[3].mxu0 }
 0x197   : > { %536 = vst.msk [vmem:[%s1043_s29 + $0x10] sm:$0xff] %vm533_vm1, %v464_v60  ;;  %v719_v61 = vpop.f32.mrb[2].mxu1 }
 0x198   : > { %545 = vst.msk [vmem:[%s1043_s29 + $0x58] sm:$0xff] %vm533_vm1, %v719_v61  ;;  %v504_v62 = vpop.f32.mrb[3].mxu1 }
 0x199   : > { %544 = vst.msk [vmem:[%s1043_s29 + $0x50] sm:$0xff] %vm533_vm1, %v504_v62 }
 0x19d   : > { %v710_v63 = vpop.f32.mrb[4].mxu0 }
 0x19e   : > { %539 = vst.msk [vmem:[%s1043_s29 + $0x28] sm:$0xff] %vm533_vm1, %v710_v63  ;;  %v474_v1 = vpop.f32.mrb[5].mxu0 }
 0x19f   : > { %538 = vst.msk [vmem:[%s1043_s29 + $0x20] sm:$0xff] %vm533_vm1, %v474_v1  ;;  %v722_v5 = vpop.f32.mrb[4].mxu1 }
 0x1a0   : > { %547 = vst.msk [vmem:[%s1043_s29 + $0x68] sm:$0xff] %vm533_vm1, %v722_v5  ;;  %v514_v6 = vpop.f32.mrb[5].mxu1 }
 0x1a1   : > { %546 = vst.msk [vmem:[%s1043_s29 + $0x60] sm:$0xff] %vm533_vm1, %v514_v6 }
 0x1a5   : > { %v713_v7 = vpop.f32.mrb[6].mxu0 }
 0x1a6   : > { %541 = vst.msk [vmem:[%s1043_s29 + $0x38] sm:$0xff] %vm533_vm1, %v713_v7  ;;  %v484_v8 = vpop.f32.mrb[7].mxu0 }
 0x1a7   : > { %540 = vst.msk [vmem:[%s1043_s29 + $0x30] sm:$0xff] %vm533_vm1, %v484_v8  ;;  %v725_v11 = vpop.f32.mrb[6].mxu1 }
 0x1a8   : > { %549 = vst.msk [vmem:[%s1043_s29 + $0x78] sm:$0xff] %vm533_vm1, %v725_v11  ;;  %v524_v12 = vpop.f32.mrb[7].mxu1 }
 0x1a9   : > { %548 = vst.msk [vmem:[%s1043_s29 + $0x70] sm:$0xff] %vm533_vm1, %v524_v12 }
 0x1aa PF: > { %s12_s13 = sadd.s32 1, %s840_s13   ;;  %s1095_s9 = smov %s832_s11 }
 0x1ab   : > { %p9_p7 = scmp.ge.s32.totalorder %s12_s13, 6   ;;  %s1096_s10 = smov %s836_s12 }
 0x1ac   : > { %s1097_s11 = smov %s1100_s14  ;;  %s1098_s12 = smov %s1104_s15 }
 0x1ad   :  { %11 = sbr.rel (!%p9_p7) target bundleno = 3 (0x3), region = 61 }

</bundles_post_ra>
